<compile_context>
chip_gen: v5e
topology: v5e:2x2
jax: 0.10.0
libtpu: 0.0.40
codegen_flags: <defaults>
</compile_context>

<pallas_src>
import functools
import math

import jax
import jax.numpy as jnp
from jax.experimental import pallas as pl
from jax.experimental.pallas import tpu as pltpu

LANE = 128


def _round_up(n, m=LANE):
    return ((n + m - 1) // m) * m


# ----------------------------- Fused Pallas kernel ---------------------------

def _fused_mlp_kernel(x_ref, w_ref, b_ref, o_ref, *, relu_flags):
    """Whole network in one kernel; intermediates never leave VMEM/vregs.

    x_ref: (M, D)     input activations, D % 128 == 0
    w_ref: (L, D, D)  packed zero-padded layer weights  (y = x @ W + b)
    b_ref: (L, 1, D)  packed zero-padded layer biases
    o_ref: (M, D)     padded output -> single unmasked full-lane store
    relu_flags[i] (static): apply ReLU after layer i.
    """
    out = x_ref[...]
    for li, apply_relu in enumerate(relu_flags):
        w = w_ref[li]                      # (D, D)  static index
        b = b_ref[li]                      # (1, D)  broadcasts over rows
        out = jnp.dot(out, w,
                      preferred_element_type=jnp.float32,
                      precision=jax.lax.Precision.HIGHEST) + b
        if apply_relu:
            out = jnp.maximum(out, 0.0)
    o_ref[...] = out.astype(o_ref.dtype)


# --------------------------------- Forward -----------------------------------

@functools.partial(jax.jit, static_argnames=("relu_flags", "output_shape"))
def fused_net_forward(w_packed, b_packed, relu_flags, x, output_shape):
    """Single-dispatch forward: pad input, one fused pallas_call, slice output."""
    M, in_dim = x.shape
    L, d_pad, _ = w_packed.shape
    if in_dim != d_pad:
        x = jnp.pad(x, ((0, 0), (0, d_pad - in_dim)))

    itemsize = jnp.dtype(x.dtype).itemsize
    flops = 2 * M * d_pad * d_pad * L
    bytes_accessed = (M * d_pad * 2 + w_packed.size + b_packed.size) * itemsize

    out_padded = pl.pallas_call(
        functools.partial(_fused_mlp_kernel, relu_flags=relu_flags),
        out_shape=jax.ShapeDtypeStruct((M, d_pad), x.dtype),
        in_specs=[pl.BlockSpec(memory_space=pltpu.MemorySpace.VMEM)] * 3,
        out_specs=pl.BlockSpec(memory_space=pltpu.MemorySpace.VMEM),
        cost_estimate=pl.CostEstimate(flops=flops, transcendentals=0,
                                      bytes_accessed=bytes_accessed),
    )(x, w_packed, b_packed)

    return out_padded[:, :output_shape]


# ------------------------------ Parameter init -------------------------------

def _fanin_init(key, in_dim, out_dim):
    # basic_init / fanin-style: U(-1/sqrt(fan_in), 1/sqrt(fan_in))
    bound = 1.0 / math.sqrt(in_dim)
    kw, kb = jax.random.split(key)
    w = jax.random.uniform(kw, (in_dim, out_dim), jnp.float32, -bound, bound)
    b = jax.random.uniform(kb, (out_dim,), jnp.float32, -bound, bound)
    return w, b


def _uniform_init(key, in_dim, out_dim, scale=3e-3):
    # net_last_init_func = uniform_init: U(-3e-3, 3e-3)
    kw, kb = jax.random.split(key)
    w = jax.random.uniform(kw, (in_dim, out_dim), jnp.float32, -scale, scale)
    b = jax.random.uniform(kb, (out_dim,), jnp.float32, -scale, scale)
    return w, b


def make_net_params(key, input_dim, base_hidden_shapes, append_hidden_shapes,
                    output_shape):
    """Build params with true fan-in init, then pad+pack ONCE for the kernel."""
    raw_layers = []                       # (w[K,N], b[N], relu?)
    in_dim = input_dim
    for h in list(base_hidden_shapes) + list(append_hidden_shapes):
        key, sub = jax.random.split(key)
        w, b = _fanin_init(sub, in_dim, h)
        raw_layers.append((w, b, True))
        in_dim = h
    key, sub = jax.random.split(key)
    w, b = _uniform_init(sub, in_dim, output_shape)
    raw_layers.append((w, b, False))

    # Zero-pad every layer to (d_pad, d_pad) and pack into single arrays.
    dims = [input_dim, output_shape] + list(base_hidden_shapes) + \
           list(append_hidden_shapes)
    d_pad = _round_up(max(dims))
    w_list, b_list = [], []
    for (wi, bi, _) in raw_layers:
        k, n = wi.shape
        w_list.append(jnp.pad(wi, ((0, d_pad - k), (0, d_pad - n))))
        b_list.append(jnp.pad(bi, (0, d_pad - n)).reshape(1, d_pad))
    return {
        "w_packed": jnp.stack(w_list),                      # (L, d_pad, d_pad)
        "b_packed": jnp.stack(b_list),                      # (L, 1, d_pad)
        "relu_flags": tuple(r for (_, _, r) in raw_layers),
        "raw_layers": raw_layers,                           # for reference check
        "d_pad": d_pad,
    }


# ----------------------------------- main ------------------------------------

if __name__ == "__main__":
    key = jax.random.PRNGKey(0)

    batch = 8
    input_dim = 32
    base_hidden_shapes = [32, 32]      # base MLP; base.output_shape = 32
    append_hidden_shapes = [32]        # one append_fc
    output_shape = 8

    kp, kx = jax.random.split(key)
    params = make_net_params(kp, input_dim, base_hidden_shapes,
                             append_hidden_shapes, output_shape)
    x = jax.random.normal(kx, (batch, input_dim), jnp.float32)

    y = fused_net_forward(params["w_packed"], params["b_packed"],
                          params["relu_flags"], x, output_shape)
    jax.block_until_ready(y)

    # Reference check in plain JAX against the un-padded parameters.
    ref = x
    for (w, b, relu) in params["raw_layers"]:
        ref = jnp.dot(ref, w, precision=jax.lax.Precision.HIGHEST) + b
        if relu:
            ref = jnp.maximum(ref, 0.0)

    assert y.shape == (batch, output_shape)
    assert jnp.allclose(y, ref, atol=1e-5, rtol=1e-5)

    print("KERNEL_OK")
</pallas_src>

<mosaic_0001>
module attributes {stable_mosaic.version = 11 : i64} {
  func.func @_fused_mlp_kernel(%arg0: memref<8x128xf32, #tpu.memory_space<vmem>>, %arg1: memref<4x128x128xf32, #tpu.memory_space<vmem>>, %arg2: memref<4x1x128xf32, #tpu.memory_space<vmem>>, %arg3: memref<8x128xf32, #tpu.memory_space<vmem>>) attributes {dimension_semantics = [], scalar_prefetch = 0 : i64, scratch_operands = 0 : i64, tpu.core_type = #tpu.core_type<tc>} {
    %c0 = arith.constant 0 : index
    %c0_0 = arith.constant 0 : index
    %0 = vector.load %arg0[%c0, %c0_0] : memref<8x128xf32, #tpu.memory_space<vmem>>, vector<8x128xf32>
    %c0_1 = arith.constant 0 : index
    %c0_2 = arith.constant 0 : index
    %c0_3 = arith.constant 0 : index
    %1 = vector.load %arg1[%c0_1, %c0_2, %c0_3] : memref<4x128x128xf32, #tpu.memory_space<vmem>>, vector<1x128x128xf32>
    %2 = vector.shape_cast %1 : vector<1x128x128xf32> to vector<128x128xf32>
    %c0_4 = arith.constant 0 : index
    %c0_5 = arith.constant 0 : index
    %c0_6 = arith.constant 0 : index
    %3 = vector.load %arg2[%c0_4, %c0_5, %c0_6] : memref<4x1x128xf32, #tpu.memory_space<vmem>>, vector<1x1x128xf32>
    %4 = vector.shape_cast %3 : vector<1x1x128xf32> to vector<1x128xf32>
    %cst = arith.constant dense<0.000000e+00> : vector<8x128xf32>
    %5 = tpu.matmul %0, %2, %cst {dimension_numbers = #tpu.dot_dimension_numbers<[1], [0], [0], [1], [0, 0, 1, 1], [], []>, precision = #tpu.contract_precision<fp32>} : vector<8x128xf32>, vector<128x128xf32>, vector<8x128xf32> -> vector<8x128xf32>
    %6 = vector.broadcast %4 : vector<1x128xf32> to vector<8x128xf32>
    %7 = arith.addf %5, %6 : vector<8x128xf32>
    %cst_7 = arith.constant 0.000000e+00 : f32
    %8 = vector.broadcast %cst_7 : f32 to vector<8x128xf32>
    %9 = arith.maximumf %7, %8 : vector<8x128xf32>
    %c1 = arith.constant 1 : index
    %c0_8 = arith.constant 0 : index
    %c0_9 = arith.constant 0 : index
    %10 = vector.load %arg1[%c1, %c0_8, %c0_9] : memref<4x128x128xf32, #tpu.memory_space<vmem>>, vector<1x128x128xf32>
    %11 = vector.shape_cast %10 : vector<1x128x128xf32> to vector<128x128xf32>
    %c1_10 = arith.constant 1 : index
    %c0_11 = arith.constant 0 : index
    %c0_12 = arith.constant 0 : index
    %12 = vector.load %arg2[%c1_10, %c0_11, %c0_12] : memref<4x1x128xf32, #tpu.memory_space<vmem>>, vector<1x1x128xf32>
    %13 = vector.shape_cast %12 : vector<1x1x128xf32> to vector<1x128xf32>
    %cst_13 = arith.constant dense<0.000000e+00> : vector<8x128xf32>
    %14 = tpu.matmul %9, %11, %cst_13 {dimension_numbers = #tpu.dot_dimension_numbers<[1], [0], [0], [1], [0, 0, 1, 1], [], []>, precision = #tpu.contract_precision<fp32>} : vector<8x128xf32>, vector<128x128xf32>, vector<8x128xf32> -> vector<8x128xf32>
    %15 = vector.broadcast %13 : vector<1x128xf32> to vector<8x128xf32>
    %16 = arith.addf %14, %15 : vector<8x128xf32>
    %cst_14 = arith.constant 0.000000e+00 : f32
    %17 = vector.broadcast %cst_14 : f32 to vector<8x128xf32>
    %18 = arith.maximumf %16, %17 : vector<8x128xf32>
    %c2 = arith.constant 2 : index
    %c0_15 = arith.constant 0 : index
    %c0_16 = arith.constant 0 : index
    %19 = vector.load %arg1[%c2, %c0_15, %c0_16] : memref<4x128x128xf32, #tpu.memory_space<vmem>>, vector<1x128x128xf32>
    %20 = vector.shape_cast %19 : vector<1x128x128xf32> to vector<128x128xf32>
    %c2_17 = arith.constant 2 : index
    %c0_18 = arith.constant 0 : index
    %c0_19 = arith.constant 0 : index
    %21 = vector.load %arg2[%c2_17, %c0_18, %c0_19] : memref<4x1x128xf32, #tpu.memory_space<vmem>>, vector<1x1x128xf32>
    %22 = vector.shape_cast %21 : vector<1x1x128xf32> to vector<1x128xf32>
    %cst_20 = arith.constant dense<0.000000e+00> : vector<8x128xf32>
    %23 = tpu.matmul %18, %20, %cst_20 {dimension_numbers = #tpu.dot_dimension_numbers<[1], [0], [0], [1], [0, 0, 1, 1], [], []>, precision = #tpu.contract_precision<fp32>} : vector<8x128xf32>, vector<128x128xf32>, vector<8x128xf32> -> vector<8x128xf32>
    %24 = vector.broadcast %22 : vector<1x128xf32> to vector<8x128xf32>
    %25 = arith.addf %23, %24 : vector<8x128xf32>
    %cst_21 = arith.constant 0.000000e+00 : f32
    %26 = vector.broadcast %cst_21 : f32 to vector<8x128xf32>
    %27 = arith.maximumf %25, %26 : vector<8x128xf32>
    %c3 = arith.constant 3 : index
    %c0_22 = arith.constant 0 : index
    %c0_23 = arith.constant 0 : index
    %28 = vector.load %arg1[%c3, %c0_22, %c0_23] : memref<4x128x128xf32, #tpu.memory_space<vmem>>, vector<1x128x128xf32>
    %29 = vector.shape_cast %28 : vector<1x128x128xf32> to vector<128x128xf32>
    %c3_24 = arith.constant 3 : index
    %c0_25 = arith.constant 0 : index
    %c0_26 = arith.constant 0 : index
    %30 = vector.load %arg2[%c3_24, %c0_25, %c0_26] : memref<4x1x128xf32, #tpu.memory_space<vmem>>, vector<1x1x128xf32>
    %31 = vector.shape_cast %30 : vector<1x1x128xf32> to vector<1x128xf32>
    %cst_27 = arith.constant dense<0.000000e+00> : vector<8x128xf32>
    %32 = tpu.matmul %27, %29, %cst_27 {dimension_numbers = #tpu.dot_dimension_numbers<[1], [0], [0], [1], [0, 0, 1, 1], [], []>, precision = #tpu.contract_precision<fp32>} : vector<8x128xf32>, vector<128x128xf32>, vector<8x128xf32> -> vector<8x128xf32>
    %33 = vector.broadcast %31 : vector<1x128xf32> to vector<8x128xf32>
    %34 = arith.addf %32, %33 : vector<8x128xf32>
    %c0_28 = arith.constant 0 : index
    %c0_29 = arith.constant 0 : index
    %35 = vector.load %arg3[%c0_28, %c0_29] : memref<8x128xf32, #tpu.memory_space<vmem>>, vector<8x128xf32>
    tpu.vector_store %arg3[%c0_28, %c0_29], %34 {strides = array<i32>} : memref<8x128xf32, #tpu.memory_space<vmem>>, vector<8x128xf32>,
    return
  }
}

</mosaic_0001>

<bundles_post_ra>
// kernel: fused_net_forward.1
= control target key start
LH: loop header
LB: loop body
LE: loop exit
PB: predicated region body
PF: predicated region fallthrough
CT: control target
= control target key end

     0   :  { %8 = vsyncpa [#allocation3], 0  ;;  %s2523_s0 = inlined_call_operand.vmem [shape: f32[8,128], index: 0, kind: input, shape index: {}]   ;;  %s2524_s1 = inlined_call_operand.hbm [shape: f32[4,128,128], index: 1, kind: input, shape index: {}]   ;;  %s2525_s2 = inlined_call_operand.vmem [shape: f32[4,1,128], index: 2, kind: input, shape index: {}]   ;;  %s2526_s3 = inlined_call_operand.hbm [shape: f32[8,128], index: 3, kind: output, shape index: {}]  }
   0x1   :  { %9 = vsyncpa [#allocation4], 0  ;;  %s16_s14 = sshll.u32 %s2524_s1, 4  ;;  %s1566_s15 = smov [#allocation2]   ;;  %s17_s14 = int_to_ptr.hbm [resolvable:$true] %s16_s14 }
   0x2   :  { %s18_s16 = sshll.u32 %s1566_s15, 4  ;;  %s1567_s17 = smov 128   ;;  %s19_s16 = int_to_ptr.vmem [resolvable:$true] %s18_s16 }
   0x3   :  { %s1568_s18 = smov 8  }
   0x4   :  { %24 = dma.hbm_to_vmem [thread:$0]  %s17_s14, 8192, %s19_s16, [#allocation3], %s1567_s17, %s1567_s17, %s1568_s18  }
   0x5   :  { %1562 = dma.done.wait [#allocation3], 8192  }
   0x6   :  { %1563 = vsyncadd [#allocation3], 4294959104  ;;  %v47_v0 = vld [vmem:[#allocation2 + $0x78] sm:$0xff]  ;;  %v46_v1 = vld [vmem:[#allocation2 + $0x70] sm:$0xff]  ;;  %s1569_s27 = smov [#allocation5]   ;;  %s1493_s4 = sshll.u32 %s2526_s3, 4  ;;  %s1494_s4 = int_to_ptr.hbm [resolvable:$true] %s1493_s4 }
   0x7   :  { %v45_v2 = vld [vmem:[#allocation2 + $0x68] sm:$0xff]  ;;  %v1593_v3 = vand.u32 4294901760, %v47_v0  ;;  %v1595_v4 = vand.u32 4294901760, %v46_v1  ;;  %v44_v6 = vld [vmem:[#allocation2 + $0x60] sm:$0xff]  ;;  %v43_v7 = vld [vmem:[#allocation2 + $0x58] sm:$0xff]  ;;  %s1491_s28 = sshll.u32 %s1569_s27, 4  ;;  %s1492_s28 = int_to_ptr.vmem [resolvable:$true] %s1491_s28 }
   0x8   :  { %v1597_v5 = vand.u32 4294901760, %v45_v2  ;;  %v42_v8 = vld [vmem:[#allocation2 + $0x50] sm:$0xff]  ;;  %v1599_v9 = vand.u32 4294901760, %v44_v6  ;;  %v1601_v10 = vand.u32 4294901760, %v43_v7  ;;  %v41_v12 = vld [vmem:[#allocation2 + $0x48] sm:$0xff]  ;;  %v40_v13 = vld [vmem:[#allocation2 + $0x40] sm:$0xff] }
   0x9   :  { %v1603_v11 = vand.u32 4294901760, %v42_v8  ;;  %53 = vmatpush.msra.mxu0 %v1593_v3  ;;  %v1607_v14 = vsub.f32 %v47_v0, %v1593_v3  ;;  %v1610_v15 = vsub.f32 %v46_v1, %v1595_v4  ;;  %v1615_v17 = vand.u32 4294901760, %v41_v12  ;;  %249 = vmatpush.msra.mxu3 %v1593_v3  ;;  %v39_v21 = vld [vmem:[#allocation2 + $0x38] sm:$0xff]  ;;  %v38_v34 = vld [vmem:[#allocation2 + $0x30] sm:$0xff]  ;;  %v37_v35 = vld [vmem:[#allocation2 + $0x28] sm:$0xff] }
   0xa   :  { %v1613_v16 = vsub.f32 %v45_v2, %v1597_v5  ;;  %v1619_v18 = vsub.f32 %v44_v6, %v1599_v9  ;;  %v1622_v19 = vsub.f32 %v43_v7, %v1601_v10  ;;  %v1624_v20 = vand.u32 4294901760, %v40_v13  ;;  %v36_v42 = vld [vmem:[#allocation2 + $0x20] sm:$0xff]  ;;  %v35_v47 = vld [vmem:[#allocation2 + $0x18] sm:$0xff]  ;;  %v34_v53 = vld [vmem:[#allocation2 + $0x10] sm:$0xff] }
   0xb   :  { %55 = vmatpush.msra.mxu0 %v1595_v4  ;;  %v95_v22 = vand.u32 4294901760, %v1607_v14  ;;  %v101_v23 = vand.u32 4294901760, %v1610_v15  ;;  %v1631_v25 = vsub.f32 %v42_v8, %v1603_v11  ;;  %196 = vmatpush.msra.mxu2 %v1607_v14  ;;  %v1637_v28 = vsub.f32 %v41_v12, %v1615_v17  ;;  %v33_v61 = vld [vmem:[#allocation2 + $0x8] sm:$0xff]  ;;  %v32_v2 = vld [vmem:[#allocation2] sm:$0xff] }
   0xc   :  { %v107_v24 = vand.u32 4294901760, %v1613_v16  ;;  %v113_v26 = vand.u32 4294901760, %v1619_v18  ;;  %v119_v27 = vand.u32 4294901760, %v1622_v19  ;;  %251 = vmatpush.msra.mxu3 %v1595_v4  ;;  %v1650_v32 = vand.u32 4294901760, %v39_v21 }
   0xd   :  { %v96_v29 = vsub.f32 %v1607_v14, %v95_v22  ;;  %57 = vmatpush.msra.mxu0 %v1597_v5  ;;  %v102_v30 = vsub.f32 %v1610_v15, %v101_v23  ;;  %199 = vmatpush.msra.mxu2 %v1610_v15  ;;  %v1654_v33 = vsub.f32 %v40_v13, %v1624_v20  ;;  %v125_v39 = vand.u32 4294901760, %v1631_v25  ;;  %v410_v14 = vld [vmem:[#allocation2 + $0xf8] sm:$0xff] }
   0xe   :  { %v108_v31 = vsub.f32 %v1613_v16, %v107_v24  ;;  %253 = vmatpush.msra.mxu3 %v1597_v5  ;;  %v114_v38 = vsub.f32 %v1619_v18, %v113_v26  ;;  %v120_v40 = vsub.f32 %v1622_v19, %v119_v27  ;;  %v131_v41 = vand.u32 4294901760, %v1637_v28 }
   0xf   :  { %v97_v36 = vand.u32 4294901760, %v96_v29  ;;  %v103_v37 = vand.u32 4294901760, %v102_v30  ;;  %59 = vmatpush.msra.mxu0 %v1599_v9  ;;  %202 = vmatpush.msra.mxu2 %v1613_v16  ;;  %v1669_v44 = vand.u32 4294901760, %v38_v34  ;;  %v1672_v45 = vsub.f32 %v39_v21, %v1650_v32  ;;  %v31_v29 = vld [vmem:[%s2523_s0] sm:$0xff] }
  0x10   :  { %255 = vmatpush.msra.mxu3 %v1599_v9  ;;  %v109_v43 = vand.u32 4294901760, %v108_v31  ;;  %v1674_v46 = vand.u32 4294901760, %v37_v35  ;;  %v137_v48 = vand.u32 4294901760, %v1654_v33  ;;  %v115_v49 = vand.u32 4294901760, %v114_v38 }
  0x11   :  { %98 = vmatpush.msra.mxu1 %v97_v36  ;;  %61 = vmatpush.msra.mxu0 %v1601_v10  ;;  %v126_v50 = vsub.f32 %v1631_v25, %v125_v39  ;;  %v1684_v51 = vsub.f32 %v38_v34, %v1669_v44  ;;  %v1686_v52 = vand.u32 4294901760, %v36_v42  ;;  %v1688_v54 = vand.u32 4294901760, %v35_v47 }
  0x12   :  { %205 = vmatpush.msra.mxu2 %v1619_v18  ;;  %257 = vmatpush.msra.mxu3 %v1601_v10  ;;  %v121_v55 = vand.u32 4294901760, %v120_v40  ;;  %v132_v56 = vsub.f32 %v1637_v28, %v131_v41  ;;  %v143_v57 = vand.u32 4294901760, %v1672_v45  ;;  %v1698_v58 = vsub.f32 %v37_v35, %v1674_v46 }
  0x13   :  { %104 = vmatpush.msra.mxu1 %v103_v37  ;;  %63 = vmatpush.msra.mxu0 %v1603_v11  ;;  %v138_v59 = vsub.f32 %v1654_v33, %v137_v48  ;;  %v1703_v60 = vand.u32 4294901760, %v34_v53  ;;  %v127_v62 = vand.u32 4294901760, %v126_v50  ;;  %v149_v63 = vand.u32 4294901760, %v1684_v51 }
  0x14   :  { %208 = vmatpush.msra.mxu2 %v1622_v19  ;;  %259 = vmatpush.msra.mxu3 %v1603_v11  ;;  %v1710_v0 = vsub.f32 %v36_v42, %v1686_v52  ;;  %v1713_v1 = vsub.f32 %v35_v47, %v1688_v54  ;;  %v133_v6 = vand.u32 4294901760, %v132_v56  ;;  %v144_v7 = vsub.f32 %v1672_v45, %v143_v57  ;;  %v403_v19 = vld [vmem:[#allocation2 + $0xc0] sm:$0xff] }
  0x15   :  { %110 = vmatpush.msra.mxu1 %v109_v43  ;;  %65 = vmatpush.msra.mxu0 %v1615_v17  ;;  %v155_v8 = vand.u32 4294901760, %v1698_v58  ;;  %v1722_v12 = vand.u32 4294901760, %v33_v61  ;;  %v139_v13 = vand.u32 4294901760, %v138_v59  ;;  %v1725_v21 = vsub.f32 %v34_v53, %v1703_v60 }
  0x16   :  { %211 = vmatpush.msra.mxu2 %v1631_v25  ;;  %261 = vmatpush.msra.mxu3 %v1615_v17  ;;  %v150_v30 = vsub.f32 %v1684_v51, %v149_v63  ;;  %v161_v31 = vand.u32 4294901760, %v1710_v0  ;;  %v1737_v34 = vand.u32 4294901760, %v32_v2  ;;  %v1739_v35 = vand.u32 4294901760, %v31_v29 }
  0x17   :  { %116 = vmatpush.msra.mxu1 %v115_v49  ;;  %67 = vmatpush.msra.mxu0 %v1624_v20  ;;  %v167_v36 = vand.u32 4294901760, %v1713_v1  ;;  %v145_v37 = vand.u32 4294901760, %v144_v7  ;;  %v156_v38 = vsub.f32 %v1698_v58, %v155_v8  ;;  %v1749_v40 = vsub.f32 %v33_v61, %v1722_v12 }
  0x18   :  { %214 = vmatpush.msra.mxu2 %v1637_v28  ;;  %263 = vmatpush.msra.mxu3 %v1624_v20  ;;  %v85_v42 = vsub.f32 %v31_v29, %v1739_v35  ;;  %v151_v43 = vand.u32 4294901760, %v150_v30  ;;  %v162_v47 = vsub.f32 %v1710_v0, %v161_v31  ;;  %v173_v49 = vand.u32 4294901760, %v1725_v21 }
  0x19   :  { %122 = vmatpush.msra.mxu1 %v121_v55  ;;  %69 = vmatpush.msra.mxu0 %v1650_v32  ;;  %v1760_v50 = vsub.f32 %v32_v2, %v1737_v34  ;;  %v157_v53 = vand.u32 4294901760, %v156_v38  ;;  %v168_v55 = vsub.f32 %v1713_v1, %v167_v36  ;;  %v179_v56 = vand.u32 4294901760, %v1749_v40 }
  0x1a   :  { %217 = vmatpush.msra.mxu2 %v1654_v33  ;;  %265 = vmatpush.msra.mxu3 %v1650_v32  ;;  %v86_v59 = vand.u32 4294901760, %v85_v42  ;;  %v163_v61 = vand.u32 4294901760, %v162_v47  ;;  %v408_v47 = vld [vmem:[#allocation2 + $0xe8] sm:$0xff]  ;;  %v1802_v15 = vand.u32 4294901760, %v410_v14  ;;  %v402_v33 = vld [vmem:[#allocation2 + $0xb8] sm:$0xff] }
  0x1b   :  { %128 = vmatpush.msra.mxu1 %v127_v62  ;;  %71 = vmatpush.msra.mxu0 %v1669_v44  ;;  %v174_v62 = vsub.f32 %v1725_v21, %v173_v49  ;;  %v185_v2 = vand.u32 4294901760, %v1760_v50  ;;  %v180_v7 = vsub.f32 %v1749_v40, %v179_v56  ;;  %v1806_v16 = vand.u32 4294901760, %v408_v47 }
  0x1c   :  { %220 = vmatpush.msra.mxu2 %v1672_v45  ;;  %267 = vmatpush.msra.mxu3 %v1669_v44  ;;  %v1881_v45 = vand.u32 4294901760, %v402_v33 }
  0x1d   :  { %134 = vmatpush.msra.mxu1 %v133_v6  ;;  %73 = vmatpush.msra.mxu0 %v1674_v46  ;;  %v169_v6 = vand.u32 4294901760, %v168_v55  ;;  %v175_v29 = vand.u32 4294901760, %v174_v62  ;;  %v186_v30 = vsub.f32 %v1760_v50, %v185_v2 }
  0x1e   :  { %223 = vmatpush.msra.mxu2 %v1684_v51  ;;  %269 = vmatpush.msra.mxu3 %v1674_v46  ;;  %v1896_v51 = vsub.f32 %v402_v33, %v1881_v45 }
  0x1f   :  { %140 = vmatpush.msra.mxu1 %v139_v13  ;;  %75 = vmatpush.msra.mxu0 %v1686_v52  ;;  %v87_v13 = vsub.f32 %v85_v42, %v86_v59 }
  0x20   :  { %226 = vmatpush.msra.mxu2 %v1698_v58  ;;  %271 = vmatpush.msra.mxu3 %v1686_v52 }
  0x21   :  { %146 = vmatpush.msra.mxu1 %v145_v37  ;;  %77 = vmatpush.msra.mxu0 %v1688_v54  ;;  %v181_v37 = vand.u32 4294901760, %v180_v7  ;;  %v88_v38 = vand.u32 4294901760, %v87_v13  ;;  %v1842_v13 = vand.u32 4294901760, %v403_v19 }
  0x22   :  { %229 = vmatpush.msra.mxu2 %v1710_v0  ;;  %273 = vmatpush.msra.mxu3 %v1688_v54  ;;  %v396_v0 = vld [vmem:[#allocation2 + $0x88] sm:$0xff] }
  0x23   :  { %152 = vmatpush.msra.mxu1 %v151_v43  ;;  %79 = vmatpush.msra.mxu0 %v1703_v60  ;;  %v187_v43 = vand.u32 4294901760, %v186_v30 }
  0x24   :  { %232 = vmatpush.msra.mxu2 %v1713_v1  ;;  %275 = vmatpush.msra.mxu3 %v1703_v60  ;;  %v395_v1 = vld [vmem:[#allocation2 + $0x80] sm:$0xff] }
  0x25   :  { %158 = vmatpush.msra.mxu1 %v157_v53  ;;  %81 = vmatpush.msra.mxu0 %v1722_v12  ;;  %v405_v53 = vld [vmem:[#allocation2 + $0xd0] sm:$0xff] }
  0x26   :  { %235 = vmatpush.msra.mxu2 %v1725_v21  ;;  %277 = vmatpush.msra.mxu3 %v1722_v12  ;;  %v1813_v55 = vand.u32 4294901760, %v405_v53 }
  0x27   :  { %164 = vmatpush.msra.mxu1 %v163_v61  ;;  %83 = vmatpush.msra.mxu0 %v1737_v34  ;;  %v1825_v61 = vsub.f32 %v408_v47, %v1806_v16 }
  0x28   :  { %238 = vmatpush.msra.mxu2 %v1749_v40  ;;  %279 = vmatpush.msra.mxu3 %v1737_v34  ;;  %v1847_v30 = vsub.f32 %v405_v53, %v1813_v55 }
  0x29   :  { %290 = vmatpush.msrb.mxu0 %v95_v22  ;;  %170 = vmatpush.msra.mxu1 %v169_v6  ;;  %v409_v22 = vld [vmem:[#allocation2 + $0xf0] sm:$0xff]  ;;  %v471_v7 = vand.u32 4294901760, %v1825_v61 }
  0x2a   :  { %241 = vmatpush.msra.mxu2 %v1760_v50  ;;  %283 = vmatmul.f32.vlgmr.msra.gmra.mxu3 %v86_v59 }
  0x2b   :  { %294 = vmatpush.msrb.mxu0 %v101_v23  ;;  %176 = vmatpush.msra.mxu1 %v175_v29  ;;  %v1804_v23 = vand.u32 4294901760, %v409_v22 }
  0x2c   :  { %244 = vmatmul.f32.vlgmr.msra.gmra.mxu2 %v85_v42  ;;  %89 = vmatmul.f32.vlgmr.msra.gmra.mxu0 %v88_v38  ;;  %v406_v42 = vld [vmem:[#allocation2 + $0xd8] sm:$0xff] }
  0x2d   :  { %298 = vmatpush.msrb.mxu0 %v107_v24  ;;  %182 = vmatpush.msra.mxu1 %v181_v37  ;;  %v407_v24 = vld [vmem:[#allocation2 + $0xe0] sm:$0xff]  ;;  %v1822_v59 = vsub.f32 %v409_v22, %v1804_v23  ;;  %v472_v37 = vsub.f32 %v1825_v61, %v471_v7 }
  0x2e   :  { %v1809_v18 = vand.u32 4294901760, %v407_v24  ;;  %417 = vmatpush.msrb.mxu2 %v1802_v15 }
  0x2f   :  { %302 = vmatpush.msrb.mxu0 %v113_v26  ;;  %188 = vmatpush.msra.mxu1 %v187_v43  ;;  %v1811_v26 = vand.u32 4294901760, %v406_v42  ;;  %v1870_v43 = vsub.f32 %v403_v19, %v1842_v13  ;;  %v473_v53 = vand.u32 4294901760, %v472_v37 }
  0x30   :  { %190 = vmatmul.f32.vlgmr.msra.gmra.mxu1 %v1739_v35  ;;  %v1830_v6 = vsub.f32 %v407_v24, %v1809_v18  ;;  %419 = vmatpush.msrb.mxu2 %v1804_v23  ;;  %v489_v24 = vand.u32 4294901760, %v1847_v30 }
  0x31   :  { %357 = vmatpush.msrb.mxu1 %v1593_v3  ;;  %306 = vmatpush.msrb.mxu0 %v119_v27  ;;  %v404_v3 = vld [vmem:[#allocation2 + $0xc8] sm:$0xff]  ;;  %v1819_v27 = vsub.f32 %v410_v14, %v1802_v15 }
  0x32   :  { %v1827_v62 = vand.u32 4294901760, %v404_v3  ;;  %v477_v29 = vand.u32 4294901760, %v1830_v6  ;;  %421 = vmatpush.msrb.mxu2 %v1806_v16  ;;  %v400_v14 = vld [vmem:[#allocation2 + $0xa8] sm:$0xff] }
  0x33   :  { %359 = vmatpush.msrb.mxu1 %v1595_v4  ;;  %310 = vmatpush.msrb.mxu0 %v125_v39  ;;  %v1834_v4 = vsub.f32 %v406_v42, %v1811_v26  ;;  %v459_v25 = vand.u32 4294901760, %v1819_v27  ;;  %v465_v39 = vand.u32 4294901760, %v1822_v59  ;;  %v399_v42 = vld [vmem:[#allocation2 + $0xa0] sm:$0xff]  ;;  %v1889_v19 = vand.u32 4294901760, %v400_v14 }
  0x34   :  { %v478_v47 = vsub.f32 %v1830_v6, %v477_v29  ;;  %423 = vmatpush.msrb.mxu2 %v1809_v18 }
  0x35   :  { %361 = vmatpush.msrb.mxu1 %v1597_v5  ;;  %314 = vmatpush.msrb.mxu0 %v131_v41  ;;  %v460_v5 = vsub.f32 %v1819_v27, %v459_v25  ;;  %v466_v28 = vsub.f32 %v1822_v59, %v465_v39  ;;  %v1859_v41 = vsub.f32 %v404_v3, %v1827_v62 }
  0x36   :  { %425 = vmatpush.msrb.mxu2 %v1811_v26 }
  0x37   :  { %363 = vmatpush.msrb.mxu1 %v1599_v9  ;;  %318 = vmatpush.msrb.mxu0 %v137_v48  ;;  %v483_v9 = vand.u32 4294901760, %v1834_v4  ;;  %v401_v48 = vld [vmem:[#allocation2 + $0xb0] sm:$0xff]  ;;  %v461_v38 = vand.u32 4294901760, %v460_v5  ;;  %v467_v22 = vand.u32 4294901760, %v466_v28  ;;  %v479_v5 = vand.u32 4294901760, %v478_v47 }
  0x38   :  { %v490_v28 = vsub.f32 %v1847_v30, %v489_v24  ;;  %427 = vmatpush.msrb.mxu2 %v1813_v55 }
  0x39   :  { %365 = vmatpush.msrb.mxu1 %v1601_v10  ;;  %322 = vmatpush.msrb.mxu0 %v143_v57  ;;  %v495_v10 = vand.u32 4294901760, %v1859_v41  ;;  %v1883_v57 = vand.u32 4294901760, %v401_v48  ;;  %v484_v3 = vsub.f32 %v1834_v4, %v483_v9 }
  0x3a   :  { %462 = vmatpush.msrb.mxu3 %v461_v38  ;;  %v507_v38 = vand.u32 4294901760, %v1896_v51  ;;  %429 = vmatpush.msrb.mxu2 %v1827_v62 }
  0x3b   :  { %367 = vmatpush.msrb.mxu1 %v1603_v11  ;;  %326 = vmatpush.msrb.mxu0 %v149_v63  ;;  %v501_v11 = vand.u32 4294901760, %v1870_v43  ;;  %v398_v63 = vld [vmem:[#allocation2 + $0x98] sm:$0xff]  ;;  %v1903_v37 = vsub.f32 %v401_v48, %v1883_v57  ;;  %v496_v58 = vsub.f32 %v1859_v41, %v495_v10  ;;  %v485_v33 = vand.u32 4294901760, %v484_v3 }
  0x3c   :  { %468 = vmatpush.msrb.mxu3 %v467_v22  ;;  %v1916_v48 = vsub.f32 %v400_v14, %v1889_v19  ;;  %v1918_v22 = vand.u32 4294901760, %v398_v63  ;;  %431 = vmatpush.msrb.mxu2 %v1842_v13 }
  0x3d   :  { %369 = vmatpush.msrb.mxu1 %v1615_v17  ;;  %330 = vmatpush.msrb.mxu0 %v155_v8  ;;  %v1905_v17 = vand.u32 4294901760, %v399_v42  ;;  %v397_v8 = vld [vmem:[#allocation2 + $0x90] sm:$0xff]  ;;  %v513_v47 = vand.u32 4294901760, %v1903_v37 }
  0x3e   :  { %474 = vmatpush.msrb.mxu3 %v473_v53  ;;  %v1931_v53 = vand.u32 4294901760, %v397_v8  ;;  %v519_v3 = vand.u32 4294901760, %v1916_v48  ;;  %433 = vmatpush.msrb.mxu2 %v1881_v45 }
  0x3f   :  { %371 = vmatpush.msrb.mxu1 %v1624_v20  ;;  %334 = vmatpush.msrb.mxu0 %v161_v31  ;;  %v502_v20 = vsub.f32 %v1870_v43, %v501_v11  ;;  %v491_v31 = vand.u32 4294901760, %v490_v28  ;;  %v1929_v14 = vsub.f32 %v399_v42, %v1905_v17  ;;  %v1942_v42 = vsub.f32 %v398_v63, %v1918_v22 }
  0x40   :  { %480 = vmatpush.msrb.mxu3 %v479_v5  ;;  %v1944_v5 = vand.u32 4294901760, %v396_v0  ;;  %v514_v21 = vsub.f32 %v1903_v37, %v513_v47  ;;  %435 = vmatpush.msrb.mxu2 %v1883_v57  ;;  %v1955_v63 = vsub.f32 %v397_v8, %v1931_v53  ;;  %v1957_v28 = vand.u32 4294901760, %v395_v1 }
  0x41   :  { %373 = vmatpush.msrb.mxu1 %v1650_v32  ;;  %338 = vmatpush.msrb.mxu0 %v167_v36  ;;  %v497_v32 = vand.u32 4294901760, %v496_v58  ;;  %v508_v36 = vsub.f32 %v1896_v51, %v507_v38  ;;  %v520_v40 = vsub.f32 %v1916_v48, %v519_v3 }
  0x42   :  { %486 = vmatpush.msrb.mxu3 %v485_v33  ;;  %v1968_v58 = vsub.f32 %v396_v0, %v1944_v5  ;;  %437 = vmatpush.msrb.mxu2 %v1889_v19  ;;  %v1978_v8 = vsub.f32 %v395_v1, %v1957_v28 }
  0x43   :  { %375 = vmatpush.msrb.mxu1 %v1669_v44  ;;  %342 = vmatpush.msrb.mxu0 %v173_v49  ;;  %v503_v44 = vand.u32 4294901760, %v502_v20  ;;  %v525_v49 = vand.u32 4294901760, %v1929_v14 }
  0x44   :  { %492 = vmatpush.msrb.mxu3 %v491_v31  ;;  %v543_v20 = vand.u32 4294901760, %v1968_v58  ;;  %439 = vmatpush.msrb.mxu2 %v1905_v17  ;;  %v549_v31 = vand.u32 4294901760, %v1978_v8 }
  0x45   :  { %377 = vmatpush.msrb.mxu1 %v1674_v46  ;;  %346 = vmatpush.msrb.mxu0 %v179_v56  ;;  %v509_v46 = vand.u32 4294901760, %v508_v36  ;;  %v531_v56 = vand.u32 4294901760, %v1942_v42  ;;  %v526_v50 = vsub.f32 %v1929_v14, %v525_v49 }
  0x46   :  { %498 = vmatpush.msrb.mxu3 %v497_v32  ;;  %441 = vmatpush.msrb.mxu2 %v1918_v22  ;;  %v544_v32 = vsub.f32 %v1968_v58, %v543_v20 }
  0x47   :  { %379 = vmatpush.msrb.mxu1 %v1686_v52  ;;  %350 = vmatpush.msrb.mxu0 %v185_v2  ;;  %v515_v52 = vand.u32 4294901760, %v514_v21  ;;  %v537_v2 = vand.u32 4294901760, %v1955_v63  ;;  %v532_v33 = vsub.f32 %v1942_v42, %v531_v56  ;;  %v527_v0 = vand.u32 4294901760, %v526_v50 }
  0x48   :  { %352 = vmatmul.f32.vlgmr.msrb.gmra.mxu0 %v1739_v35  ;;  %504 = vmatpush.msrb.mxu3 %v503_v44 }
  0x49   :  { %381 = vmatpush.msrb.mxu1 %v1688_v54  ;;  %560 = vmatpush.msra.mxu0 %v1819_v27  ;;  %v521_v54 = vand.u32 4294901760, %v520_v40  ;;  %v765_v40 = vld [vmem:[#allocation2 + $0x130] sm:$0xff] }
  0x4a   :  { %510 = vmatpush.msrb.mxu3 %v509_v46  ;;  %443 = vmatpush.msrb.mxu2 %v1931_v53  ;;  %v766_v46 = vld [vmem:[#allocation2 + $0x138] sm:$0xff] }
  0x4b   :  { %383 = vmatpush.msrb.mxu1 %v1703_v60  ;;  %563 = vmatpush.msra.mxu0 %v1822_v59  ;;  %v538_v60 = vsub.f32 %v1955_v63, %v537_v2 }
  0x4c   :  { %516 = vmatpush.msrb.mxu3 %v515_v52  ;;  %445 = vmatpush.msrb.mxu2 %v1944_v5 }
  0x4d   :  { %385 = vmatpush.msrb.mxu1 %v1722_v12  ;;  %566 = vmatpush.msra.mxu0 %v1825_v61  ;;  %v533_v12 = vand.u32 4294901760, %v532_v33  ;;  %v539_v1 = vand.u32 4294901760, %v538_v60  ;;  %v774_v61 = vld [vmem:[#allocation2 + $0x178] sm:$0xff]  ;;  %v763_v33 = vld [vmem:[#allocation2 + $0x120] sm:$0xff]  ;;  %v2152_v60 = vand.u32 4294901760, %v766_v46 }
  0x4e   :  { %522 = vmatpush.msrb.mxu3 %v521_v54  ;;  %447 = vmatpush.msrb.mxu2 %v1957_v28 }
  0x4f   :  { %387 = vmatpush.msrb.mxu1 %v1737_v34  ;;  %569 = vmatpush.msra.mxu0 %v1830_v6  ;;  %v550_v34 = vsub.f32 %v1978_v8, %v549_v31  ;;  %v772_v6 = vld [vmem:[#allocation2 + $0x168] sm:$0xff] }
  0x50   :  { %389 = vmatmul.f32.vlgmr.msrb.gmra.mxu1 %v1739_v35  ;;  %528 = vmatpush.msrb.mxu3 %v527_v0  ;;  %v545_v35 = vand.u32 4294901760, %v544_v32 }
  0x51   :  { %613 = vmatpush.msra.mxu1 %v1802_v15  ;;  %572 = vmatpush.msra.mxu0 %v1834_v4  ;;  %v551_v36 = vand.u32 4294901760, %v550_v34  ;;  %v2085_v4 = vand.u32 4294901760, %v774_v61 }
  0x52   :  { %534 = vmatpush.msrb.mxu3 %v533_v12  ;;  %654 = vmatpush.msra.mxu2 %v459_v25 }
  0x53   :  { %615 = vmatpush.msra.mxu1 %v1804_v23  ;;  %575 = vmatpush.msra.mxu0 %v1847_v30 }
  0x54   :  { %540 = vmatpush.msrb.mxu3 %v539_v1  ;;  %658 = vmatpush.msra.mxu2 %v465_v39  ;;  %v2089_v39 = vand.u32 4294901760, %v772_v6 }
  0x55   :  { %617 = vmatpush.msra.mxu1 %v1806_v16  ;;  %578 = vmatpush.msra.mxu0 %v1859_v41 }
  0x56   :  { %546 = vmatpush.msrb.mxu3 %v545_v35  ;;  %662 = vmatpush.msra.mxu2 %v471_v7  ;;  %v771_v7 = vld [vmem:[#allocation2 + $0x160] sm:$0xff]  ;;  %v762_v35 = vld [vmem:[#allocation2 + $0x118] sm:$0xff] }
  0x57   :  { %619 = vmatpush.msra.mxu1 %v1809_v18  ;;  %581 = vmatpush.msra.mxu0 %v1870_v43  ;;  %v2091_v41 = vand.u32 4294901760, %v771_v7 }
  0x58   :  { %552 = vmatpush.msrb.mxu3 %v551_v36  ;;  %666 = vmatpush.msra.mxu2 %v477_v29  ;;  %v769_v29 = vld [vmem:[#allocation2 + $0x150] sm:$0xff] }
  0x59   :  { %621 = vmatpush.msra.mxu1 %v1811_v26  ;;  %584 = vmatpush.msra.mxu0 %v1896_v51  ;;  %v2095_v43 = vand.u32 4294901760, %v769_v29 }
  0x5a   :  { %721 = vmatpush.msra.mxu3 %v1802_v15  ;;  %670 = vmatpush.msra.mxu2 %v483_v9  ;;  %v1510_v15 = vld [vmem:[%s2525_s2] ss:$0 sm:$0xff] }
  0x5b   :  { %623 = vmatpush.msra.mxu1 %v1813_v55  ;;  %587 = vmatpush.msra.mxu0 %v1903_v37  ;;  %v2110_v37 = vsub.f32 %v771_v7, %v2091_v41 }
  0x5c   :  { %723 = vmatpush.msra.mxu3 %v1804_v23  ;;  %674 = vmatpush.msra.mxu2 %v489_v24  ;;  %v768_v24 = vld [vmem:[#allocation2 + $0x148] sm:$0xff] }
  0x5d   :  { %625 = vmatpush.msra.mxu1 %v1827_v62  ;;  %590 = vmatpush.msra.mxu0 %v1916_v48  ;;  %v2107_v51 = vand.u32 4294901760, %v768_v24 }
  0x5e   :  { %725 = vmatpush.msra.mxu3 %v1806_v16  ;;  %678 = vmatpush.msra.mxu2 %v495_v10  ;;  %v767_v10 = vld [vmem:[#allocation2 + $0x140] sm:$0xff] }
  0x5f   :  { %627 = vmatpush.msra.mxu1 %v1842_v13  ;;  %593 = vmatpush.msra.mxu0 %v1929_v14  ;;  %v2118_v48 = vand.u32 4294901760, %v767_v10 }
  0x60   :  { %727 = vmatpush.msra.mxu3 %v1809_v18  ;;  %682 = vmatpush.msra.mxu2 %v501_v11  ;;  %v2104_v11 = vsub.f32 %v772_v6, %v2089_v39 }
  0x61   :  { %629 = vmatpush.msra.mxu1 %v1881_v45  ;;  %596 = vmatpush.msra.mxu0 %v1942_v42  ;;  %v2126_v42 = vsub.f32 %v768_v24, %v2107_v51 }
  0x62   :  { %729 = vmatpush.msra.mxu3 %v1811_v26  ;;  %686 = vmatpush.msra.mxu2 %v507_v38  ;;  %v2116_v38 = vsub.f32 %v769_v29, %v2095_v43  ;;  %v835_v14 = vand.u32 4294901760, %v2104_v11 }
  0x63   :  { %631 = vmatpush.msra.mxu1 %v1883_v57  ;;  %599 = vmatpush.msra.mxu0 %v1955_v63  ;;  %v859_v54 = vand.u32 4294901760, %v2126_v42 }
  0x64   :  { %731 = vmatpush.msra.mxu3 %v1813_v55  ;;  %690 = vmatpush.msra.mxu2 %v513_v47  ;;  %v836_v21 = vsub.f32 %v2104_v11, %v835_v14  ;;  %v853_v63 = vand.u32 4294901760, %v2116_v38 }
  0x65   :  { %633 = vmatpush.msra.mxu1 %v1889_v19  ;;  %602 = vmatpush.msra.mxu0 %v1968_v58 }
  0x66   :  { %733 = vmatpush.msra.mxu3 %v1827_v62  ;;  %694 = vmatpush.msra.mxu2 %v519_v3  ;;  %v773_v62 = vld [vmem:[#allocation2 + $0x170] sm:$0xff]  ;;  %v841_v3 = vand.u32 4294901760, %v2110_v37  ;;  %v854_v32 = vsub.f32 %v2116_v38, %v853_v63 }
  0x67   :  { %635 = vmatpush.msra.mxu1 %v1905_v17  ;;  %605 = vmatpush.msra.mxu0 %v1978_v8  ;;  %v2087_v25 = vand.u32 4294901760, %v773_v62 }
  0x68   :  { %735 = vmatpush.msra.mxu3 %v1842_v13  ;;  %698 = vmatpush.msra.mxu2 %v525_v49  ;;  %v770_v13 = vld [vmem:[#allocation2 + $0x158] sm:$0xff]  ;;  %v842_v50 = vsub.f32 %v2110_v37, %v841_v3  ;;  %v855_v6 = vand.u32 4294901760, %v854_v32 }
  0x69   :  { %637 = vmatpush.msra.mxu1 %v1918_v22  ;;  %v2093_v9 = vand.u32 4294901760, %v770_v13  ;;  %781 = vmatpush.msrb.mxu0 %v2085_v4 }
  0x6a   :  { %737 = vmatpush.msra.mxu3 %v1881_v45  ;;  %702 = vmatpush.msra.mxu2 %v531_v56  ;;  %v843_v36 = vand.u32 4294901760, %v842_v50 }
  0x6b   :  { %639 = vmatpush.msra.mxu1 %v1931_v53  ;;  %783 = vmatpush.msrb.mxu0 %v2087_v25 }
  0x6c   :  { %739 = vmatpush.msra.mxu3 %v1883_v57  ;;  %706 = vmatpush.msra.mxu2 %v537_v2  ;;  %v2098_v57 = vsub.f32 %v774_v61, %v2085_v4  ;;  %v764_v2 = vld [vmem:[#allocation2 + $0x128] sm:$0xff]  ;;  %v2179_v61 = vand.u32 4294901760, %v762_v35 }
  0x6d   :  { %641 = vmatpush.msra.mxu1 %v1944_v5  ;;  %785 = vmatpush.msrb.mxu0 %v2089_v39  ;;  %v2160_v34 = vand.u32 4294901760, %v764_v2 }
  0x6e   :  { %741 = vmatpush.msra.mxu3 %v1889_v19  ;;  %710 = vmatpush.msra.mxu2 %v543_v20  ;;  %v2101_v19 = vsub.f32 %v773_v62, %v2087_v25  ;;  %v837_v20 = vand.u32 4294901760, %v836_v21 }
  0x6f   :  { %643 = vmatpush.msra.mxu1 %v1957_v28  ;;  %787 = vmatpush.msrb.mxu0 %v2091_v41 }
  0x70   :  { %743 = vmatpush.msra.mxu3 %v1905_v17  ;;  %714 = vmatpush.msra.mxu2 %v549_v31  ;;  %v2113_v17 = vsub.f32 %v770_v13, %v2093_v9  ;;  %v829_v47 = vand.u32 4294901760, %v2101_v19  ;;  %v2154_v31 = vand.u32 4294901760, %v765_v40 }
  0x71   :  { %789 = vmatpush.msrb.mxu0 %v2093_v9 }
  0x72   :  { %745 = vmatpush.msra.mxu3 %v1918_v22  ;;  %v823_v22 = vand.u32 4294901760, %v2098_v57  ;;  %v830_v44 = vsub.f32 %v2101_v19, %v829_v47  ;;  %v847_v49 = vand.u32 4294901760, %v2113_v17 }
  0x73   :  { %791 = vmatpush.msrb.mxu0 %v2095_v43 }
  0x74   :  { %747 = vmatpush.msra.mxu3 %v1931_v53  ;;  %v831_v52 = vand.u32 4294901760, %v830_v44  ;;  %v848_v0 = vsub.f32 %v2113_v17, %v847_v49 }
  0x75   :  { %793 = vmatpush.msrb.mxu0 %v2107_v51 }
  0x76   :  { %749 = vmatpush.msra.mxu3 %v1944_v5  ;;  %v824_v5 = vsub.f32 %v2098_v57, %v823_v22 }
  0x77   :  { %795 = vmatpush.msrb.mxu0 %v2118_v48 }
  0x78   :  { %751 = vmatpush.msra.mxu3 %v1957_v28  ;;  %v2141_v28 = vsub.f32 %v767_v10, %v2118_v48  ;;  %v825_v58 = vand.u32 4294901760, %v824_v5 }
  0x79   :  { %797 = vmatpush.msrb.mxu0 %v2152_v60 }
  0x7a   :  { %826 = vmatpush.msrb.mxu1 %v825_v58  ;;  %v865_v1 = vand.u32 4294901760, %v2141_v28 }
  0x7b   :  { %799 = vmatpush.msrb.mxu0 %v2154_v31 }
  0x7c   :  { %832 = vmatpush.msrb.mxu1 %v831_v52  ;;  %v866_v7 = vsub.f32 %v2141_v28, %v865_v1 }
  0x7d   :  { %801 = vmatpush.msrb.mxu0 %v2160_v34 }
  0x7e   :  { %838 = vmatpush.msrb.mxu1 %v837_v20  ;;  %v867_v44 = vand.u32 4294901760, %v866_v7 }
  0x80   :  { %844 = vmatpush.msrb.mxu1 %v843_v36 }
  0xa9   :  { %v90_v23 = vpop.f32.mrf.mxu0 }
  0xaa   :  { %v91_v16 = vadd.f32 %v1510_v15, %v90_v23  ;;  %v2163_v15 = vsub.f32 %v766_v46, %v2152_v60  ;;  %v2167_v23 = vsub.f32 %v765_v40, %v2154_v31 }
  0xac   :  { %v877_v13 = vand.u32 4294901760, %v2167_v23 }
  0xad   :  { %v191_v18 = vpop.f32.mrf.mxu1  ;;  %v284_v59 = vpop.f32.mrf.mxu3 }
  0xae   :  { %v192_v26 = vadd.f32 %v191_v18, %v91_v16  ;;  %v2169_v16 = vand.u32 4294901760, %v763_v33  ;;  %v878_v21 = vsub.f32 %v2167_v23, %v877_v13 }
  0xaf   :  { %v245_v55 = vpop.f32.mrf.mxu2 }
  0xb0   :  { %v246_v27 = vadd.f32 %v245_v55, %v192_v26  ;;  %v860_v26 = vsub.f32 %v2126_v42, %v859_v54  ;;  %v849_v55 = vand.u32 4294901760, %v848_v0  ;;  %v2187_v29 = vsub.f32 %v763_v33, %v2169_v16  ;;  %803 = vmatpush.msrb.mxu0 %v2169_v16 }
  0xb1   :  { %v879_v50 = vand.u32 4294901760, %v878_v21 }
  0xb2   :  { %v285_v30 = vadd.f32 %v284_v59, %v246_v27  ;;  %v871_v27 = vand.u32 4294901760, %v2163_v15  ;;  %v2177_v59 = vsub.f32 %v764_v2, %v2160_v34  ;;  %850 = vmatpush.msrb.mxu1 %v849_v55  ;;  %v861_v24 = vand.u32 4294901760, %v860_v26  ;;  %805 = vmatpush.msrb.mxu0 %v2179_v61  ;;  %v759_v26 = vld [vmem:[#allocation2 + $0x100] sm:$0xff] }
  0xb3   :  { %v889_v46 = vand.u32 4294901760, %v2187_v29 }
  0xb4   :  { %v872_v10 = vsub.f32 %v2163_v15, %v871_v27  ;;  %856 = vmatpush.msrb.mxu1 %v855_v6  ;;  %v810_v6 = vand.u32 4294901760, %v759_v26 }
  0xb5   :  { %v890_v2 = vsub.f32 %v2187_v29, %v889_v46 }
  0xb6   :  { %862 = vmatpush.msrb.mxu1 %v861_v24  ;;  %v912_v24 = vsub.f32 %v759_v26, %v810_v6 }
  0xb7   :  { %v891_v20 = vand.u32 4294901760, %v890_v2 }
  0xb8   :  { %868 = vmatpush.msrb.mxu1 %v867_v44  ;;  %v913_v44 = vand.u32 4294901760, %v912_v24 }
  0xc5   :  { %v353_v45 = vpop.f32.mrf.mxu0 }
  0xc6   :  { %v354_v53 = vadd.f32 %v353_v45, %v285_v30  ;;  %v883_v45 = vand.u32 4294901760, %v2177_v59 }
  0xc8   :  { %v884_v58 = vsub.f32 %v2177_v59, %v883_v45 }
  0xcd   :  { %v390_v56 = vpop.f32.mrf.mxu1 }
  0xce   :  { %v391_v8 = vadd.f32 %v390_v56, %v354_v53  ;;  %v2196_v53 = vsub.f32 %v762_v35, %v2179_v61  ;;  %v873_v56 = vand.u32 4294901760, %v872_v10  ;;  %v760_v35 = vld [vmem:[#allocation2 + $0x108] sm:$0xff] }
  0xd0   :  { %v393_v12 = vmax.f32 %v391_v8, 0.0  ;;  %v895_v52 = vand.u32 4294901760, %v2196_v53  ;;  %874 = vmatpush.msrb.mxu1 %v873_v56  ;;  %v885_v8 = vand.u32 4294901760, %v884_v58 }
  0xd2   :  { %v448_v18 = vand.u32 4294901760, %v393_v12  ;;  %v896_v33 = vsub.f32 %v2196_v53, %v895_v52  ;;  %880 = vmatpush.msrb.mxu1 %v879_v50 }
  0xd4   :  { %v449_v62 = vsub.f32 %v393_v12, %v448_v18  ;;  %554 = vmatmul.f32.vlgmr.msrb.gmra.mxu3 %v448_v18  ;;  %886 = vmatpush.msrb.mxu1 %v885_v8  ;;  %v897_v0 = vand.u32 4294901760, %v896_v33  ;;  %v761_v12 = vld [vmem:[#allocation2 + $0x110] sm:$0xff]  ;;  %v1131_v8 = vld [vmem:[#allocation2 + $0x1c0] sm:$0xff]  ;;  %v1130_v33 = vld [vmem:[#allocation2 + $0x1b8] sm:$0xff] }
  0xd5   :  { %977 = vmatpush.msrb.mxu3 %v2085_v4  ;;  %v806_v32 = vand.u32 4294901760, %v761_v12 }
  0xd6   :  { %608 = vmatmul.f32.vlgmr.msra.gmra.mxu0 %v449_v62  ;;  %v450_v30 = vand.u32 4294901760, %v449_v62  ;;  %892 = vmatpush.msrb.mxu1 %v891_v20  ;;  %v1129_v20 = vld [vmem:[#allocation2 + $0x1b0] sm:$0xff] }
  0xd7   :  { %979 = vmatpush.msrb.mxu3 %v2087_v25  ;;  %v900_v36 = vsub.f32 %v761_v12, %v806_v32  ;;  %807 = vmatpush.msrb.mxu0 %v806_v32 }
  0xd8   :  { %647 = vmatmul.f32.vlgmr.msra.gmra.mxu1 %v450_v30  ;;  %v451_v5 = vsub.f32 %v449_v62, %v450_v30 }
  0xd9   :  { %981 = vmatpush.msrb.mxu3 %v2089_v39  ;;  %898 = vmatpush.msrb.mxu1 %v897_v0  ;;  %v901_v55 = vand.u32 4294901760, %v900_v36 }
  0xda   :  { %v452_v40 = vand.u32 4294901760, %v451_v5 }
  0xdb   :  { %983 = vmatpush.msrb.mxu3 %v2091_v41  ;;  %v902_v7 = vsub.f32 %v900_v36, %v901_v55 }
  0xdc   :  { %453 = vmatmul.f32.vlgmr.msrb.gmra.mxu2 %v452_v40  ;;  %753 = vmatmul.f32.vlgmr.msra.gmra.mxu3 %v448_v18  ;;  %v914_v40 = vsub.f32 %v912_v24, %v913_v44 }
  0xdd   :  { %924 = vmatpush.msrb.mxu2 %v2098_v57  ;;  %985 = vmatpush.msrb.mxu3 %v2093_v9  ;;  %v903_v10 = vand.u32 4294901760, %v902_v7  ;;  %v1136_v57 = vld [vmem:[#allocation2 + $0x1e8] sm:$0xff]  ;;  %v2347_v7 = vand.u32 4294901760, %v1130_v33 }
  0xde   :  { %v915_v56 = vand.u32 4294901760, %v914_v40 }
  0xdf   :  { %927 = vmatpush.msrb.mxu2 %v2101_v19  ;;  %987 = vmatpush.msrb.mxu3 %v2095_v43 }
  0xe0   :  { %904 = vmatpush.msrb.mxu1 %v903_v10 }
  0xe1   :  { %930 = vmatpush.msrb.mxu2 %v2104_v11  ;;  %989 = vmatpush.msrb.mxu3 %v2107_v51 }
  0xe3   :  { %933 = vmatpush.msrb.mxu2 %v2110_v37  ;;  %991 = vmatpush.msrb.mxu3 %v2118_v48  ;;  %v1135_v37 = vld [vmem:[#allocation2 + $0x1e0] sm:$0xff] }
  0xe4   :  { %716 = vmatmul.f32.vlgmr.msra.gmra.mxu2 %v448_v18  ;;  %v808_v18 = vand.u32 4294901760, %v760_v35 }
  0xe5   :  { %936 = vmatpush.msrb.mxu2 %v2113_v17  ;;  %993 = vmatpush.msrb.mxu3 %v2152_v60  ;;  %v1134_v17 = vld [vmem:[#allocation2 + $0x1d8] sm:$0xff] }
  0xe6   :  { %v906_v62 = vsub.f32 %v760_v35, %v808_v18  ;;  %809 = vmatpush.msrb.mxu0 %v808_v18  ;;  %v1128_v35 = vld [vmem:[#allocation2 + $0x1a8] sm:$0xff] }
  0xe7   :  { %939 = vmatpush.msrb.mxu2 %v2116_v38  ;;  %995 = vmatpush.msrb.mxu3 %v2154_v31  ;;  %v1133_v38 = vld [vmem:[#allocation2 + $0x1d0] sm:$0xff] }
  0xe8   :  { %v907_v30 = vand.u32 4294901760, %v906_v62  ;;  %811 = vmatpush.msrb.mxu0 %v810_v6 }
  0xe9   :  { %942 = vmatpush.msrb.mxu2 %v2126_v42  ;;  %997 = vmatpush.msrb.mxu3 %v2160_v34 }
  0xea   :  { %1018 = vmatpush.msra.mxu0 %v823_v22  ;;  %v908_v5 = vsub.f32 %v906_v62, %v907_v30  ;;  %v2289_v22 = vand.u32 4294901760, %v1135_v37 }
  0xeb   :  { %945 = vmatpush.msrb.mxu2 %v2141_v28  ;;  %999 = vmatpush.msrb.mxu3 %v2169_v16 }
  0xec   :  { %1022 = vmatpush.msra.mxu0 %v829_v47  ;;  %v909_v21 = vand.u32 4294901760, %v908_v5  ;;  %v2291_v47 = vand.u32 4294901760, %v1134_v17 }
  0xed   :  { %948 = vmatpush.msrb.mxu2 %v2163_v15  ;;  %1001 = vmatpush.msrb.mxu3 %v2179_v61 }
  0xee   :  { %1026 = vmatpush.msra.mxu0 %v835_v14  ;;  %910 = vmatpush.msrb.mxu1 %v909_v21  ;;  %v2293_v14 = vand.u32 4294901760, %v1133_v38  ;;  %v1126_v21 = vld [vmem:[#allocation2 + $0x198] sm:$0xff] }
  0xef   :  { %951 = vmatpush.msrb.mxu2 %v2167_v23  ;;  %1003 = vmatpush.msrb.mxu3 %v806_v32 }
  0xf0   :  { %1030 = vmatpush.msra.mxu0 %v841_v3  ;;  %916 = vmatpush.msrb.mxu1 %v915_v56  ;;  %v1132_v3 = vld [vmem:[#allocation2 + $0x1c8] sm:$0xff]  ;;  %v2360_v56 = vsub.f32 %v1130_v33, %v2347_v7 }
  0xf1   :  { %954 = vmatpush.msrb.mxu2 %v2177_v59  ;;  %1005 = vmatpush.msrb.mxu3 %v808_v18 }
  0xf2   :  { %1085 = vmatpush.msra.mxu1 %v2085_v4  ;;  %1034 = vmatpush.msra.mxu0 %v847_v49  ;;  %v1511_v4 = vld [vmem:[%s2525_s2 + $0x1] ss:$0 sm:$0xff] }
  0xf3   :  { %957 = vmatpush.msrb.mxu2 %v2187_v29  ;;  %1007 = vmatpush.msrb.mxu3 %v810_v6 }
  0xf4   :  { %1087 = vmatpush.msra.mxu1 %v2087_v25  ;;  %1038 = vmatpush.msra.mxu0 %v853_v63 }
  0xf5   :  { %960 = vmatpush.msrb.mxu2 %v2196_v53 }
  0xf6   :  { %1089 = vmatpush.msra.mxu1 %v2089_v39  ;;  %1042 = vmatpush.msra.mxu0 %v859_v54  ;;  %v2305_v54 = vand.u32 4294901760, %v1132_v3 }
  0xf7   :  { %963 = vmatpush.msrb.mxu2 %v900_v36 }
  0xf8   :  { %1091 = vmatpush.msra.mxu1 %v2091_v41  ;;  %1046 = vmatpush.msra.mxu0 %v865_v1  ;;  %v2311_v1 = vsub.f32 %v1134_v17, %v2291_v47  ;;  %v2323_v29 = vsub.f32 %v1132_v3, %v2305_v54 }
  0xf9   :  { %966 = vmatpush.msrb.mxu2 %v906_v62 }
  0xfa   :  { %1093 = vmatpush.msra.mxu1 %v2093_v9  ;;  %1050 = vmatpush.msra.mxu0 %v871_v27  ;;  %v1138_v9 = vld [vmem:[#allocation2 + $0x1f8] sm:$0xff]  ;;  %v1223_v26 = vand.u32 4294901760, %v2323_v29 }
  0xfb   :  { %969 = vmatpush.msrb.mxu2 %v912_v24  ;;  %v2283_v19 = vand.u32 4294901760, %v1138_v9 }
  0xfc   :  { %1095 = vmatpush.msra.mxu1 %v2095_v43  ;;  %1054 = vmatpush.msra.mxu0 %v877_v13  ;;  %v1137_v43 = vld [vmem:[#allocation2 + $0x1f0] sm:$0xff]  ;;  %v1211_v13 = vand.u32 4294901760, %v2311_v1 }
  0xfd   :  { %v2285_v11 = vand.u32 4294901760, %v1137_v43  ;;  %v2296_v49 = vsub.f32 %v1138_v9, %v2283_v19  ;;  %1145 = vmatpush.msra.mxu2 %v2283_v19 }
  0xfe   :  { %1097 = vmatpush.msra.mxu1 %v2107_v51  ;;  %1058 = vmatpush.msra.mxu0 %v883_v45  ;;  %v2287_v51 = vand.u32 4294901760, %v1136_v57 }
  0xff   :  { %v2299_v63 = vsub.f32 %v1137_v43, %v2285_v11  ;;  %v1187_v23 = vand.u32 4294901760, %v2296_v49  ;;  %1147 = vmatpush.msra.mxu2 %v2285_v11  ;;  %v1224_v43 = vsub.f32 %v2323_v29, %v1223_v26 }
 0x100   :  { %1099 = vmatpush.msra.mxu1 %v2118_v48  ;;  %1062 = vmatpush.msra.mxu0 %v889_v46  ;;  %v2302_v28 = vsub.f32 %v1136_v57, %v2287_v51 }
 0x101   :  { %v1188_v53 = vsub.f32 %v2296_v49, %v1187_v23  ;;  %1149 = vmatpush.msra.mxu2 %v2287_v51 }
 0x102   :  { %1101 = vmatpush.msra.mxu1 %v2152_v60  ;;  %1066 = vmatpush.msra.mxu0 %v895_v52  ;;  %v1199_v27 = vand.u32 4294901760, %v2302_v28 }
 0x103   :  { %v1189_v12 = vand.u32 4294901760, %v1188_v53  ;;  %1151 = vmatpush.msra.mxu2 %v2289_v22  ;;  %v1124_v53 = vld [vmem:[#allocation2 + $0x188] sm:$0xff] }
 0x104   :  { %1103 = vmatpush.msra.mxu1 %v2154_v31  ;;  %1070 = vmatpush.msra.mxu0 %v901_v55  ;;  %v2308_v31 = vsub.f32 %v1135_v37, %v2289_v22  ;;  %v1200_v58 = vsub.f32 %v2302_v28, %v1199_v27  ;;  %v1127_v55 = vld [vmem:[#allocation2 + $0x1a0] sm:$0xff]  ;;  %v1235_v37 = vand.u32 4294901760, %v2360_v56 }
 0x105   :  { %1190 = vmatpush.msra.mxu3 %v1189_v12  ;;  %1153 = vmatpush.msra.mxu2 %v2291_v47 }
 0x106   :  { %1105 = vmatpush.msra.mxu1 %v2160_v34  ;;  %1074 = vmatpush.msra.mxu0 %v907_v30  ;;  %v2314_v34 = vsub.f32 %v1133_v38, %v2293_v14  ;;  %v1201_v62 = vand.u32 4294901760, %v1200_v58  ;;  %v2349_v30 = vand.u32 4294901760, %v1129_v20  ;;  %v2379_v38 = vand.u32 4294901760, %v1126_v21 }
 0x107   :  { %1155 = vmatpush.msra.mxu2 %v2293_v14  ;;  %v1236_v58 = vsub.f32 %v2360_v56, %v1235_v37 }
 0x108   :  { %1107 = vmatpush.msra.mxu1 %v2169_v16  ;;  %1078 = vmatpush.msra.mxu0 %v913_v44  ;;  %v1193_v16 = vand.u32 4294901760, %v2299_v63  ;;  %v1217_v2 = vand.u32 4294901760, %v2314_v34  ;;  %v2354_v44 = vand.u32 4294901760, %v1128_v35 }
 0x109   :  { %1157 = vmatpush.msra.mxu2 %v2305_v54 }
 0x10a   :  { %1109 = vmatpush.msra.mxu1 %v2179_v61  ;;  %v1205_v61 = vand.u32 4294901760, %v2308_v31  ;;  %v1194_v46 = vsub.f32 %v2299_v63, %v1193_v16  ;;  %v1218_v5 = vsub.f32 %v2314_v34, %v1217_v2  ;;  %v2377_v17 = vsub.f32 %v1128_v35, %v2354_v44 }
 0x10c   :  { %1111 = vmatpush.msra.mxu1 %v806_v32  ;;  %v1206_v50 = vsub.f32 %v2308_v31, %v1205_v61  ;;  %v1195_v32 = vand.u32 4294901760, %v1194_v46  ;;  %v1225_v46 = vand.u32 4294901760, %v1224_v43 }
 0x10e   :  { %1113 = vmatpush.msra.mxu1 %v808_v18  ;;  %v1212_v18 = vsub.f32 %v2311_v1, %v1211_v13  ;;  %v1207_v10 = vand.u32 4294901760, %v1206_v50  ;;  %1196 = vmatpush.msra.mxu3 %v1195_v32  ;;  %v2400_v50 = vsub.f32 %v1126_v21, %v2379_v38  ;;  %v2411_v32 = vand.u32 4294901760, %v1124_v53 }
 0x110   :  { %1115 = vmatpush.msra.mxu1 %v810_v6  ;;  %v2344_v6 = vand.u32 4294901760, %v1131_v8  ;;  %v1213_v9 = vand.u32 4294901760, %v1212_v18  ;;  %1202 = vmatpush.msra.mxu3 %v1201_v62  ;;  %v2420_v62 = vsub.f32 %v1124_v53, %v2411_v32 }
 0x112   :  { %v2357_v40 = vsub.f32 %v1131_v8, %v2344_v6  ;;  %1208 = vmatpush.msra.mxu3 %v1207_v10  ;;  %1159 = vmatpush.msra.mxu2 %v2344_v6 }
 0x114   :  { %v1229_v57 = vand.u32 4294901760, %v2357_v40  ;;  %1214 = vmatpush.msra.mxu3 %v1213_v9  ;;  %1161 = vmatpush.msra.mxu2 %v2347_v7  ;;  %v1271_v9 = vand.u32 4294901760, %v2420_v62 }
 0x116   :  { %1163 = vmatpush.msra.mxu2 %v2349_v30 }
 0x118   :  { %1165 = vmatpush.msra.mxu2 %v2354_v44 }
 0x153   :  { %v609_v42 = vpop.f32.mrf.mxu0 }
 0x155   :  { %v648_v15 = vpop.f32.mrf.mxu1 }
 0x157   :  { %v555_v25 = vpop.f32.mrf.mxu3 }
 0x15f   :  { %v454_v39 = vpop.f32.mrf.mxu2  ;;  %v754_v0 = vpop.f32.mrf.mxu3 }
 0x160   :  { %v455_v41 = vadd.f32 %v1511_v4, %v454_v39  ;;  %v2364_v4 = vsub.f32 %v1129_v20, %v2349_v30  ;;  %v1125_v39 = vld [vmem:[#allocation2 + $0x190] sm:$0xff] }
 0x161   :  { %v2383_v3 = vand.u32 4294901760, %v1125_v39 }
 0x162   :  { %v556_v48 = vadd.f32 %v555_v25, %v455_v41  ;;  %v2366_v25 = vand.u32 4294901760, %v1127_v55 }
 0x163   :  { %v2403_v33 = vsub.f32 %v1125_v39, %v2383_v3 }
 0x164   :  { %v610_v60 = vadd.f32 %v609_v42, %v556_v48  ;;  %v1219_v42 = vand.u32 4294901760, %v1218_v5  ;;  %1167 = vmatpush.msra.mxu2 %v2366_v25 }
 0x165   :  { %v1265_v5 = vand.u32 4294901760, %v2403_v33 }
 0x166   :  { %v649_v59 = vadd.f32 %v648_v15, %v610_v60  ;;  %v1230_v60 = vsub.f32 %v2357_v40, %v1229_v57  ;;  %v1241_v15 = vand.u32 4294901760, %v2364_v4  ;;  %1220 = vmatpush.msra.mxu3 %v1219_v42  ;;  %1169 = vmatpush.msra.mxu2 %v2379_v38 }
 0x167   :  { %v717_v45 = vpop.f32.mrf.mxu2 }
 0x168   :  { %v718_v52 = vadd.f32 %v717_v45, %v649_v59  ;;  %v2391_v59 = vsub.f32 %v1127_v55, %v2366_v25  ;;  %v1231_v20 = vand.u32 4294901760, %v1230_v60  ;;  %1226 = vmatpush.msra.mxu3 %v1225_v46  ;;  %v1259_v55 = vand.u32 4294901760, %v2400_v50  ;;  %1171 = vmatpush.msra.mxu2 %v2383_v3 }
 0x169   :  { %v1272_v60 = vsub.f32 %v2420_v62, %v1271_v9 }
 0x16a   :  { %v755_v36 = vadd.f32 %v754_v0, %v718_v52  ;;  %v1247_v52 = vand.u32 4294901760, %v2377_v17  ;;  %v1242_v0 = vsub.f32 %v2364_v4, %v1241_v15  ;;  %v1253_v12 = vand.u32 4294901760, %v2391_v59  ;;  %1232 = vmatpush.msra.mxu3 %v1231_v20  ;;  %1173 = vmatpush.msra.mxu2 %v2411_v32 }
 0x16b   :  { %v1260_v39 = vsub.f32 %v2400_v50, %v1259_v55  ;;  %v1273_v53 = vand.u32 4294901760, %v1272_v60 }
 0x16c   :  { %v757_v24 = vmax.f32 %v755_v36, 0.0  ;;  %v1237_v36 = vand.u32 4294901760, %v1236_v58  ;;  %v1248_v18 = vsub.f32 %v2377_v17, %v1247_v52  ;;  %v1254_v10 = vsub.f32 %v2391_v59, %v1253_v12 }
 0x16d   :  { %v1261_v42 = vand.u32 4294901760, %v1260_v39 }
 0x16e   :  { %v2368_v41 = vand.u32 4294901760, %v757_v24  ;;  %1238 = vmatpush.msra.mxu3 %v1237_v36  ;;  %v1249_v21 = vand.u32 4294901760, %v1248_v18  ;;  %v1255_v43 = vand.u32 4294901760, %v1254_v10 }
 0x170   :  { %v813_v48 = vsub.f32 %v757_v24, %v2368_v41  ;;  %918 = vmatmul.f32.vlgmr.msrb.gmra.mxu1 %v2368_v41  ;;  %v1243_v24 = vand.u32 4294901760, %v1242_v0 }
 0x171   :  { %1341 = vmatpush.msrb.mxu1 %v2283_v19 }
 0x172   :  { %972 = vmatmul.f32.vlgmr.msrb.gmra.mxu2 %v813_v48  ;;  %v814_v45 = vand.u32 4294901760, %v813_v48  ;;  %1244 = vmatpush.msra.mxu3 %v1243_v24 }
 0x173   :  { %1343 = vmatpush.msrb.mxu1 %v2285_v11 }
 0x174   :  { %1011 = vmatmul.f32.vlgmr.msrb.gmra.mxu3 %v814_v45  ;;  %v815_v8 = vsub.f32 %v813_v48, %v814_v45  ;;  %v1266_v48 = vsub.f32 %v2403_v33, %v1265_v5 }
 0x175   :  { %1345 = vmatpush.msrb.mxu1 %v2287_v51  ;;  %1250 = vmatpush.msra.mxu3 %v1249_v21 }
 0x176   :  { %v816_v35 = vand.u32 4294901760, %v815_v8  ;;  %v1267_v45 = vand.u32 4294901760, %v1266_v48 }
 0x177   :  { %1347 = vmatpush.msrb.mxu1 %v2289_v22  ;;  %1256 = vmatpush.msra.mxu3 %v1255_v43 }
 0x178   :  { %817 = vmatmul.f32.vlgmr.msrb.gmra.mxu0 %v816_v35  ;;  %1117 = vmatmul.f32.vlgmr.msra.gmra.mxu1 %v2368_v41 }
 0x179   :  { %1288 = vmatpush.msrb.mxu0 %v2296_v49  ;;  %1349 = vmatpush.msrb.mxu1 %v2291_v47 }
 0x17a   :  { %1262 = vmatpush.msra.mxu3 %v1261_v42 }
 0x17b   :  { %1291 = vmatpush.msrb.mxu0 %v2299_v63  ;;  %1351 = vmatpush.msrb.mxu1 %v2293_v14 }
 0x17c   :  { %1268 = vmatpush.msra.mxu3 %v1267_v45 }
 0x17d   :  { %1294 = vmatpush.msrb.mxu0 %v2302_v28  ;;  %1353 = vmatpush.msrb.mxu1 %v2305_v54 }
 0x17e   :  { %1274 = vmatpush.msra.mxu3 %v1273_v53 }
 0x17f   :  { %1297 = vmatpush.msrb.mxu0 %v2308_v31  ;;  %1355 = vmatpush.msrb.mxu1 %v2344_v6 }
 0x180   :  { %1080 = vmatmul.f32.vlgmr.msra.gmra.mxu0 %v2368_v41  ;;  %v1123_v41 = vld [vmem:[#allocation2 + $0x180] sm:$0xff] }
 0x181   :  { %1300 = vmatpush.msrb.mxu0 %v2311_v1  ;;  %1357 = vmatpush.msrb.mxu1 %v2347_v7  ;;  %v1174_v46 = vand.u32 4294901760, %v1123_v41 }
 0x183   :  { %1303 = vmatpush.msrb.mxu0 %v2314_v34  ;;  %1359 = vmatpush.msrb.mxu1 %v2349_v30  ;;  %v1276_v58 = vsub.f32 %v1123_v41, %v1174_v46 }
 0x184   :  { %1175 = vmatpush.msra.mxu2 %v1174_v46 }
 0x185   :  { %1306 = vmatpush.msrb.mxu0 %v2323_v29  ;;  %1361 = vmatpush.msrb.mxu1 %v2354_v44  ;;  %v1277_v8 = vand.u32 4294901760, %v1276_v58 }
 0x186   :  { %1382 = vmatpush.msrb.mxu2 %v1187_v23 }
 0x187   :  { %1309 = vmatpush.msrb.mxu0 %v2357_v40  ;;  %1363 = vmatpush.msrb.mxu1 %v2366_v25  ;;  %v1278_v20 = vsub.f32 %v1276_v58, %v1277_v8 }
 0x188   :  { %1386 = vmatpush.msrb.mxu2 %v1193_v16 }
 0x189   :  { %1312 = vmatpush.msrb.mxu0 %v2360_v56  ;;  %1365 = vmatpush.msrb.mxu1 %v2379_v38  ;;  %v1279_v0 = vand.u32 4294901760, %v1278_v20 }
 0x18a   :  { %1390 = vmatpush.msrb.mxu2 %v1199_v27 }
 0x18b   :  { %1315 = vmatpush.msrb.mxu0 %v2364_v4  ;;  %1367 = vmatpush.msrb.mxu1 %v2383_v3 }
 0x18c   :  { %1394 = vmatpush.msrb.mxu2 %v1205_v61  ;;  %1280 = vmatpush.msra.mxu3 %v1279_v0 }
 0x18d   :  { %1318 = vmatpush.msrb.mxu0 %v2377_v17  ;;  %1369 = vmatpush.msrb.mxu1 %v2411_v32 }
 0x18e   :  { %1449 = vmatpush.msrb.mxu3 %v2283_v19  ;;  %1398 = vmatpush.msrb.mxu2 %v1211_v13  ;;  %v1512_v19 = vld [vmem:[%s2525_s2 + $0x2] ss:$0 sm:$0xff] }
 0x18f   :  { %1321 = vmatpush.msrb.mxu0 %v2391_v59  ;;  %1371 = vmatpush.msrb.mxu1 %v1174_v46 }
 0x190   :  { %1451 = vmatpush.msrb.mxu3 %v2285_v11  ;;  %1402 = vmatpush.msrb.mxu2 %v1217_v2  ;;  %v1513_v2 = vld [vmem:[%s2525_s2 + $0x3] ss:$0 sm:$0xff] }
 0x191   :  { %1324 = vmatpush.msrb.mxu0 %v2400_v50 }
 0x192   :  { %1453 = vmatpush.msrb.mxu3 %v2287_v51  ;;  %1406 = vmatpush.msrb.mxu2 %v1223_v26 }
 0x193   :  { %1327 = vmatpush.msrb.mxu0 %v2403_v33 }
 0x194   :  { %1455 = vmatpush.msrb.mxu3 %v2289_v22  ;;  %1410 = vmatpush.msrb.mxu2 %v1229_v57 }
 0x195   :  { %1330 = vmatpush.msrb.mxu0 %v2420_v62 }
 0x196   :  { %1457 = vmatpush.msrb.mxu3 %v2291_v47  ;;  %1414 = vmatpush.msrb.mxu2 %v1235_v37 }
 0x197   :  { %1333 = vmatpush.msrb.mxu0 %v1276_v58 }
 0x198   :  { %1459 = vmatpush.msrb.mxu3 %v2293_v14  ;;  %1418 = vmatpush.msrb.mxu2 %v1241_v15 }
 0x19a   :  { %1461 = vmatpush.msrb.mxu3 %v2305_v54  ;;  %1422 = vmatpush.msrb.mxu2 %v1247_v52 }
 0x19c   :  { %1463 = vmatpush.msrb.mxu3 %v2344_v6  ;;  %1426 = vmatpush.msrb.mxu2 %v1253_v12 }
 0x19e   :  { %1465 = vmatpush.msrb.mxu3 %v2347_v7  ;;  %1430 = vmatpush.msrb.mxu2 %v1259_v55 }
 0x1a0   :  { %1467 = vmatpush.msrb.mxu3 %v2349_v30  ;;  %1434 = vmatpush.msrb.mxu2 %v1265_v5 }
 0x1a2   :  { %1469 = vmatpush.msrb.mxu3 %v2354_v44  ;;  %1438 = vmatpush.msrb.mxu2 %v1271_v9 }
 0x1a4   :  { %1471 = vmatpush.msrb.mxu3 %v2366_v25  ;;  %1442 = vmatpush.msrb.mxu2 %v1277_v8 }
 0x1a6   :  { %1473 = vmatpush.msrb.mxu3 %v2379_v38 }
 0x1a8   :  { %1475 = vmatpush.msrb.mxu3 %v2383_v3 }
 0x1aa   :  { %1477 = vmatpush.msrb.mxu3 %v2411_v32 }
 0x1ac   :  { %1479 = vmatpush.msrb.mxu3 %v1174_v46 }
 0x1ed   :  { %v919_v11 = vpop.f32.mrf.mxu1 }
 0x1f5   :  { %v818_v51 = vpop.f32.mrf.mxu0  ;;  %v973_v14 = vpop.f32.mrf.mxu2 }
 0x1f6   :  { %v819_v22 = vadd.f32 %v1512_v19, %v818_v51  ;;  %v1118_v1 = vpop.f32.mrf.mxu1 }
 0x1f7   :  { %v1012_v63 = vpop.f32.mrf.mxu3 }
 0x1f8   :  { %v920_v47 = vadd.f32 %v919_v11, %v819_v22 }
 0x1fa   :  { %v974_v49 = vadd.f32 %v973_v14, %v920_v47 }
 0x1fc   :  { %v1013_v28 = vadd.f32 %v1012_v63, %v974_v49 }
 0x1fd   :  { %v1081_v54 = vpop.f32.mrf.mxu0 }
 0x1fe   :  { %v1082_v31 = vadd.f32 %v1081_v54, %v1013_v28 }
 0x200   :  { %v1119_v34 = vadd.f32 %v1118_v1, %v1082_v31 }
 0x202   :  { %v1121_v23 = vmax.f32 %v1119_v34, 0.0 }
 0x204   :  { %v1176_v16 = vand.u32 4294901760, %v1121_v23 }
 0x206   :  { %v1177_v27 = vsub.f32 %v1121_v23, %v1176_v16  ;;  %1282 = vmatmul.f32.vlgmr.msra.gmra.mxu3 %v1176_v16 }
 0x208   :  { %1336 = vmatmul.f32.vlgmr.msrb.gmra.mxu0 %v1177_v27  ;;  %v1178_v61 = vand.u32 4294901760, %v1177_v27 }
 0x20a   :  { %1375 = vmatmul.f32.vlgmr.msrb.gmra.mxu1 %v1178_v61  ;;  %v1179_v13 = vsub.f32 %v1177_v27, %v1178_v61 }
 0x20c   :  { %v1180_v29 = vand.u32 4294901760, %v1179_v13 }
 0x20e   :  { %1181 = vmatmul.f32.vlgmr.msra.gmra.mxu2 %v1180_v29  ;;  %1481 = vmatmul.f32.vlgmr.msrb.gmra.mxu3 %v1176_v16 }
 0x216   :  { %1444 = vmatmul.f32.vlgmr.msrb.gmra.mxu2 %v1176_v16 }
 0x285   :  { %v1337_v44 = vpop.f32.mrf.mxu0 }
 0x287   :  { %v1376_v56 = vpop.f32.mrf.mxu1 }
 0x289   :  { %v1283_v26 = vpop.f32.mrf.mxu3 }
 0x291   :  { %v1182_v6 = vpop.f32.mrf.mxu2  ;;  %v1482_v37 = vpop.f32.mrf.mxu3 }
 0x292   :  { %v1183_v7 = vadd.f32 %v1513_v2, %v1182_v6 }
 0x294   :  { %v1284_v30 = vadd.f32 %v1283_v26, %v1183_v7 }
 0x296   :  { %v1338_v40 = vadd.f32 %v1337_v44, %v1284_v30 }
 0x298   :  { %v1377_v4 = vadd.f32 %v1376_v56, %v1338_v40 }
 0x299   :  { %v1445_v25 = vpop.f32.mrf.mxu2 }
 0x29a   :  { %v1446_v57 = vadd.f32 %v1445_v25, %v1377_v4 }
 0x29c   :  { %v1483_v17 = vadd.f32 %v1482_v37, %v1446_v57 }
 0x29e   :  { %1485 = vst [vmem:[#allocation5] sm:$0xff] %v1483_v17 }
 0x29f   :  { %1496 = dma.vmem_to_hbm [thread:$0]  %s1492_s28, 128, %s1494_s4, [#allocation4]  }
 0x2a0   :  { %1564 = dma.done.wait [#allocation4], 128  }
 0x2a1   :  { %1565 = vsyncadd [#allocation4], 4294967168 }
 0x2a2   :  { %1501 = vsyncpa [#allocation3], 1 }
 0x2a3   :  { %1502 = vsyncpa [#allocation4], 1 }

</bundles_post_ra>
